<compile_context>
chip_gen: v5e
topology: v5e:2x2
jax: 0.10.0
libtpu: 0.0.40
codegen_flags: <defaults>
</compile_context>

<pallas_src>
import jax
import jax.numpy as jnp
from jax.experimental import pallas as pl
from jax.experimental.pallas import tpu as pltpu


def _round_up(x: int, m: int) -> int:
    return (x + m - 1) // m * m


def make_crossnet_kernel(num_layers: int):
    def crossnet_kernel(x_ref, wb_ref, o_ref):
        x0 = x_ref[...].astype(jnp.float32)          # (TB, D) batch tile
        w = wb_ref[0].astype(jnp.float32)            # (L, D) resident weights
        b = wb_ref[1].astype(jnp.float32)            # (L, D) resident biases

        h = x0
        # Static unroll: num_layers is a compile-time constant, so the W/B
        # slices are zero-cost static views and the whole body is visible to
        # the scheduler for interleaving with the tile DMAs.
        for l in range(num_layers):
            wl = w[l:l + 1, :]                       # (1, D) static slice
            bl = b[l:l + 1, :]                       # (1, D) static slice
            # Exact-f32 row dot: VPU multiply + XLU cross-lane reduce
            # (matches the reference bit-for-bit; MXU stays out of the way).
            s = jnp.sum(h * wl, axis=-1, keepdims=True)   # (TB, 1)
            h = h + s * x0 + bl
        o_ref[...] = h.astype(o_ref.dtype)

    return crossnet_kernel


def crossnet_forward(x, weights, biases, *, block_rows=None):
    """x: [B, D], weights: [L, D], biases: [L, D] -> [B, D]."""
    B, D = x.shape
    L, Dw = weights.shape
    assert Dw == D and biases.shape == (L, D)

    itemsize = jnp.dtype(x.dtype).itemsize

    if block_rows is None:
        # 4 live row tiles (double-buffered input + output) inside a budget
        # that is safe on every generation (v7x has only 64 MiB VMEM per TC).
        budget_bytes = 16 * 1024 * 1024
        rows = budget_bytes // (4 * D * itemsize)
        block_rows = min(2048, max(8, (rows // 8) * 8))
    # Keep >= 2 grid steps whenever the batch allows it so the "parallel"
    # batch axis can be sharded across both v7x TensorCores.
    block_rows = min(block_rows, _round_up(max(1, (B + 1) // 2), 8))
    # Sublane-aligned tile.  The ragged last tile (B % TB != 0) is handled by
    # Pallas: out-of-bounds reads are per-row garbage that never mixes into
    # valid rows, and out-of-bounds stores are dropped -> no batch padding
    # and no output slicing needed.
    TB = max(8, (min(block_rows, B) // 8) * 8)
    grid = (pl.cdiv(B, TB),)

    # Fold the (tiny) weights and biases into one resident operand:
    # one DMA stream / buffer pair instead of two.
    wb = jnp.stack([weights, biases], axis=0)        # (2, L, D)

    tile_bytes = TB * D * itemsize
    param_bytes = wb.size * jnp.dtype(wb.dtype).itemsize
    vmem_needed = 4 * tile_bytes + 2 * param_bytes
    vmem_limit = int(min(max(2 * vmem_needed, 16 * 1024 * 1024),
                         32 * 1024 * 1024))

    grid_spec = pltpu.PrefetchScalarGridSpec(
        num_scalar_prefetch=0,
        grid=grid,
        in_specs=[
            # Batch-tiled input; feature axis at its natural (full-array)
            # width D -> no 128/D HBM byte inflation for small D.
            pl.BlockSpec((TB, D), lambda i: (i, 0)),
            # Resident parameters (constant block index across the grid).
            pl.BlockSpec((2, L, D), lambda i: (0, 0, 0)),
        ],
        out_specs=pl.BlockSpec((TB, D), lambda i: (i, 0)),
    )

    # Advisory cost: bytes that actually move (unpadded) + VPU flops.
    cost = pl.CostEstimate(
        flops=5 * L * B * D,
        transcendentals=0,
        bytes_accessed=(2 * B * D + 2 * L * D) * itemsize,
    )

    # TODO(synk): on v7x, pltpu.CORE_PARALLEL on the batch axis and
    # pipeline_mode=pl.Buffered(3) on the input spec could help a bit more;
    # kept plain "parallel" + default double-buffering for portability
    # across v5e/v6e/v7x and JAX versions.
    return pl.pallas_call(
        make_crossnet_kernel(L),
        out_shape=jax.ShapeDtypeStruct((B, D), x.dtype),
        grid_spec=grid_spec,
        compiler_params=pltpu.CompilerParams(
            dimension_semantics=("parallel",),
            vmem_limit_bytes=vmem_limit,
        ),
        cost_estimate=cost,
    )(x, wb)


def crossnet_reference(x, weights, biases):
    """Pure-JAX reference mirroring the PyTorch module."""
    x0 = x
    h = x
    for l in range(weights.shape[0]):
        s = jnp.sum(h * weights[l][None, :], axis=-1, keepdims=True)
        h = h + s * x0 + biases[l][None, :]
    return h


if __name__ == "__main__":
    B, D, L = 8, 32, 3   # batch=8, input_dim=32, num_layers=3

    key = jax.random.PRNGKey(0)
    kx, kw, kb, kx2 = jax.random.split(key, 4)

    x = jax.random.normal(kx, (B, D), dtype=jnp.float32)

    # Module init: Linear(D, 1) weight ~ U(-1/sqrt(D), 1/sqrt(D)); bias zeros.
    bound = 1.0 / float(D) ** 0.5
    weights = jax.random.uniform(kw, (L, D), minval=-bound, maxval=bound,
                                 dtype=jnp.float32)
    biases = jnp.zeros((L, D), dtype=jnp.float32)

    out = jax.block_until_ready(crossnet_forward(x, weights, biases))
    ref = crossnet_reference(x, weights, biases)
    assert out.shape == (B, D)
    assert jnp.allclose(out, ref, atol=1e-5, rtol=1e-5), "mismatch (zero bias)"

    # Nonzero-bias path.
    biases_nz = 0.1 * jax.random.normal(kb, (L, D), dtype=jnp.float32)
    out_nz = jax.block_until_ready(crossnet_forward(x, weights, biases_nz))
    ref_nz = crossnet_reference(x, weights, biases_nz)
    assert jnp.allclose(out_nz, ref_nz, atol=1e-5, rtol=1e-5), \
        "mismatch (nonzero bias)"

    # Ragged batch (B not a multiple of the tile): exercises the masked last
    # tile that replaced the old pad + slice scheme.
    Br = 13
    xr = jax.random.normal(kx2, (Br, D), dtype=jnp.float32)
    out_r = jax.block_until_ready(crossnet_forward(xr, weights, biases_nz))
    ref_r = crossnet_reference(xr, weights, biases_nz)
    assert out_r.shape == (Br, D)
    assert jnp.allclose(out_r, ref_r, atol=1e-5, rtol=1e-5), \
        "mismatch (ragged batch)"

    print("KERNEL_OK")
</pallas_src>

<mosaic_0001>
module attributes {stable_mosaic.version = 11 : i64} {
  func.func @crossnet_kernel(%arg0: i32, %arg1: memref<8x32xf32, #tpu.memory_space<vmem>>, %arg2: memref<2x3x32xf32, #tpu.memory_space<vmem>>, %arg3: memref<8x32xf32, #tpu.memory_space<vmem>>) attributes {dimension_semantics = [#tpu.dimension_semantics<parallel>], iteration_bounds = array<i64: 1>, scalar_prefetch = 0 : i64, scratch_operands = 0 : i64, tpu.core_type = #tpu.core_type<tc>, window_params = [{transform_indices = @transform_0, window_bounds = array<i64: 8, 32>}, {pipeline_mode = #tpu.pipeline_mode<synchronous>, transform_indices = @transform_1, window_bounds = array<i64: 2, 3, 32>}, {transform_indices = @transform_2, window_bounds = array<i64: 8, 32>}]} {
    %c0 = arith.constant 0 : index
    %c0_0 = arith.constant 0 : index
    %0 = vector.load %arg1[%c0, %c0_0] : memref<8x32xf32, #tpu.memory_space<vmem>>, vector<8x32xf32>
    %c0_1 = arith.constant 0 : index
    %c0_2 = arith.constant 0 : index
    %c0_3 = arith.constant 0 : index
    %1 = vector.load %arg2[%c0_1, %c0_2, %c0_3] : memref<2x3x32xf32, #tpu.memory_space<vmem>>, vector<1x3x32xf32>
    %2 = vector.shape_cast %1 : vector<1x3x32xf32> to vector<3x32xf32>
    %c1 = arith.constant 1 : index
    %c0_4 = arith.constant 0 : index
    %c0_5 = arith.constant 0 : index
    %3 = vector.load %arg2[%c1, %c0_4, %c0_5] : memref<2x3x32xf32, #tpu.memory_space<vmem>>, vector<1x3x32xf32>
    %4 = vector.shape_cast %3 : vector<1x3x32xf32> to vector<3x32xf32>
    %5 = vector.extract_strided_slice %2 {offsets = [0, 0], sizes = [1, 32], strides = [1, 1]} : vector<3x32xf32> to vector<1x32xf32>
    %6 = vector.extract_strided_slice %4 {offsets = [0, 0], sizes = [1, 32], strides = [1, 1]} : vector<3x32xf32> to vector<1x32xf32>
    %7 = vector.broadcast %5 : vector<1x32xf32> to vector<8x32xf32>
    %8 = arith.mulf %0, %7 : vector<8x32xf32>
    %cst = arith.constant dense<0.000000e+00> : vector<8xf32>
    %9 = vector.multi_reduction <add>, %8, %cst [1] : vector<8x32xf32> to vector<8xf32>
    %10 = vector.shape_cast %9 : vector<8xf32> to vector<8x1xf32>
    %11 = vector.broadcast %10 : vector<8x1xf32> to vector<8x32xf32>
    %12 = arith.mulf %11, %0 : vector<8x32xf32>
    %13 = arith.addf %0, %12 : vector<8x32xf32>
    %14 = vector.broadcast %6 : vector<1x32xf32> to vector<8x32xf32>
    %15 = arith.addf %13, %14 : vector<8x32xf32>
    %16 = vector.extract_strided_slice %2 {offsets = [1, 0], sizes = [1, 32], strides = [1, 1]} : vector<3x32xf32> to vector<1x32xf32>
    %17 = vector.extract_strided_slice %4 {offsets = [1, 0], sizes = [1, 32], strides = [1, 1]} : vector<3x32xf32> to vector<1x32xf32>
    %18 = vector.broadcast %16 : vector<1x32xf32> to vector<8x32xf32>
    %19 = arith.mulf %15, %18 : vector<8x32xf32>
    %cst_6 = arith.constant dense<0.000000e+00> : vector<8xf32>
    %20 = vector.multi_reduction <add>, %19, %cst_6 [1] : vector<8x32xf32> to vector<8xf32>
    %21 = vector.shape_cast %20 : vector<8xf32> to vector<8x1xf32>
    %22 = vector.broadcast %21 : vector<8x1xf32> to vector<8x32xf32>
    %23 = arith.mulf %22, %0 : vector<8x32xf32>
    %24 = arith.addf %15, %23 : vector<8x32xf32>
    %25 = vector.broadcast %17 : vector<1x32xf32> to vector<8x32xf32>
    %26 = arith.addf %24, %25 : vector<8x32xf32>
    %27 = vector.extract_strided_slice %2 {offsets = [2, 0], sizes = [1, 32], strides = [1, 1]} : vector<3x32xf32> to vector<1x32xf32>
    %28 = vector.extract_strided_slice %4 {offsets = [2, 0], sizes = [1, 32], strides = [1, 1]} : vector<3x32xf32> to vector<1x32xf32>
    %29 = vector.broadcast %27 : vector<1x32xf32> to vector<8x32xf32>
    %30 = arith.mulf %26, %29 : vector<8x32xf32>
    %cst_7 = arith.constant dense<0.000000e+00> : vector<8xf32>
    %31 = vector.multi_reduction <add>, %30, %cst_7 [1] : vector<8x32xf32> to vector<8xf32>
    %32 = vector.shape_cast %31 : vector<8xf32> to vector<8x1xf32>
    %33 = vector.broadcast %32 : vector<8x1xf32> to vector<8x32xf32>
    %34 = arith.mulf %33, %0 : vector<8x32xf32>
    %35 = arith.addf %26, %34 : vector<8x32xf32>
    %36 = vector.broadcast %28 : vector<1x32xf32> to vector<8x32xf32>
    %37 = arith.addf %35, %36 : vector<8x32xf32>
    %c0_8 = arith.constant 0 : index
    %c0_9 = arith.constant 0 : index
    %38 = vector.load %arg3[%c0_8, %c0_9] : memref<8x32xf32, #tpu.memory_space<vmem>>, vector<8x32xf32>
    tpu.vector_store %arg3[%c0_8, %c0_9], %37 {strides = array<i32>} : memref<8x32xf32, #tpu.memory_space<vmem>>, vector<8x32xf32>,
    return
  }
  func.func @transform_0(%arg0: i32) -> (i32, i32) {
    %c0_i32 = arith.constant 0 : i32
    %c0_i32_0 = arith.constant 0 : i32
    return %arg0, %c0_i32 : i32, i32
  }
  func.func @transform_1(%arg0: i32) -> (i32, i32, i32) {
    %c0_i32 = arith.constant 0 : i32
    %c0_i32_0 = arith.constant 0 : i32
    %c0_i32_1 = arith.constant 0 : i32
    %c0_i32_2 = arith.constant 0 : i32
    return %c0_i32, %c0_i32_0, %c0_i32_1 : i32, i32, i32
  }
  func.func @transform_2(%arg0: i32) -> (i32, i32) {
    %c0_i32 = arith.constant 0 : i32
    %c0_i32_0 = arith.constant 0 : i32
    return %arg0, %c0_i32 : i32, i32
  }
}

</mosaic_0001>

<bundles_post_ra>
// kernel: tpu_custom_call.1
= control target key start
LH: loop header
LB: loop body
LE: loop exit
PB: predicated region body
PF: predicated region fallthrough
CT: control target
= control target key end

     0   :  { %s121_s0 = inlined_call_operand.vmem [shape: f32[8,32], index: 0, kind: input, shape index: {}]   ;;  %s122_s1 = inlined_call_operand.vmem [shape: f32[2,3,32], index: 1, kind: input, shape index: {}]   ;;  %s123_s2 = inlined_call_operand.hbm [shape: f32[8,32], index: 2, kind: output, shape index: {}]  }
   0x1   :  { %v12_v0 = vld [vmem:[%s121_s0] sm:$0xff] }
   0x2   :  { %v13_v1 = vld [vmem:[%s122_s1] sm:$0x7] }
   0x3   :  { %7 = vsyncpa [#allocation3], 0  ;;  %v16_v2 = vperm.slane %v13_v1, 0  ;;  %vm18_vm0 = vcmask 261120   ;;  %v61_v5 = vld [vmem:[%s122_s1 + $0x4] sm:$0x7] }
   0x4   :  { %v24_v8 = vperm.slane %v61_v5, 0  ;;  %v26_v10 = vperm.slane %v13_v1, 1  ;;  %v33_v16 = vperm.slane %v61_v5, 1  ;;  %v35_v18 = vperm.slane %v13_v1, 2  ;;  %s89_s0 = smov [#allocation2]   ;;  %s52_s17 = sshll.u32 %s123_s2, 4  ;;  %s53_s17 = int_to_ptr.hbm [resolvable:$true] %s52_s17 }
   0x5   :  { %v17_v3 = vmul.f32 %v16_v2, %v12_v0  ;;  %v42_v23 = vperm.slane %v61_v5, 2  ;;  %s50_s1 = sshll.u32 %s89_s0, 4  ;;  %s51_s1 = int_to_ptr.vmem [resolvable:$true] %s50_s1 }
   0x7   :  { %v19_v4 = vsel %vm18_vm0, %v17_v3, 0.0 }
   0x8   :  { %20 = vadd.xlane.f32.xlu0 %v19_v4 }
  0x7b   :  { %v21_v6 = vpop.xlane.xlu0 %20 }
  0x7c   :  { %v22_v7 = vmul.f32 %v21_v6, %v12_v0 }
  0x7e   :  { %v23_v9 = vadd.f32 %v22_v7, %v12_v0 }
  0x80   :  { %v25_v11 = vadd.f32 %v24_v8, %v23_v9 }
  0x82   :  { %v27_v12 = vmul.f32 %v26_v10, %v25_v11 }
  0x84   :  { %v28_v13 = vsel %vm18_vm0, %v27_v12, 0.0 }
  0x85   :  { %29 = vadd.xlane.f32.xlu0 %v28_v13 }
  0xf8   :  { %v30_v14 = vpop.xlane.xlu0 %29 }
  0xf9   :  { %v31_v15 = vmul.f32 %v30_v14, %v12_v0 }
  0xfb   :  { %v32_v17 = vadd.f32 %v31_v15, %v25_v11 }
  0xfd   :  { %v34_v19 = vadd.f32 %v33_v16, %v32_v17 }
  0xff   :  { %v36_v20 = vmul.f32 %v35_v18, %v34_v19 }
 0x101   :  { %v37_v21 = vsel %vm18_vm0, %v36_v20, 0.0 }
 0x102   :  { %38 = vadd.xlane.f32.xlu1 %v37_v21 }
 0x175   :  { %v39_v22 = vpop.xlane.xlu1 %38 }
 0x176   :  { %v40_v24 = vmul.f32 %v39_v22, %v12_v0 }
 0x178   :  { %v41_v25 = vadd.f32 %v40_v24, %v34_v19 }
 0x17a   :  { %v43_v26 = vadd.f32 %v42_v23, %v41_v25 }
 0x17c   :  { %44 = vst.msk [vmem:[#allocation2] sm:$0xff] %vm18_vm0, %v43_v26 }
 0x17d   :  { %55 = dma.vmem_to_hbm [thread:$0]  %s51_s1, 128, %s53_s17, [#allocation3]  }
 0x17e   :  { %87 = dma.done.wait [#allocation3], 128  }
 0x17f   :  { %88 = vsyncadd [#allocation3], 4294967168 }
 0x180   :  { %60 = vsyncpa [#allocation3], 1 }

</bundles_post_ra>
